<compile_context>
chip_gen: v6e
topology: v6e:2x2x1
jax: 0.10.0
libtpu: 0.0.40
codegen_flags: <defaults>
</compile_context>

<pallas_src>
import jax
import jax.numpy as jnp
from jax import lax
from jax.experimental import pallas as pl
from jax.experimental.pallas import tpu as pltpu


def _round_up(x, m):
    return (x + m - 1) // m * m


def _even_tile(total, unit, cap):
    """Tile size: multiple of `unit`, ~<= cap, and (when more than one grid
    step is needed) an even step count so v7x's two TensorCores stay balanced."""
    if total <= cap:
        return _round_up(max(total, unit), unit)
    steps = _round_up(pl.cdiv(total, cap), 2)
    return _round_up(pl.cdiv(total, steps), unit)


# --------------------------------------------------------------------------
# Pallas kernel 1: fused valid-flag + bounding-box mask, tiled over points.
# Coordinates are channel-major (4, P) so points map to the 128-lane axis;
# the bbox bounds (6 scalars) live in SMEM.
# --------------------------------------------------------------------------
def _mask_kernel(bounds_ref, coord_ref, mask_ref):
    c = coord_ref[...]                                   # (4, tp)
    x, y, z, v = c[0:1], c[1:2], c[2:3], c[3:4]          # each (1, tp)
    inside = ((x >= bounds_ref[0]) & (x <= bounds_ref[3]) &
              (y >= bounds_ref[1]) & (y <= bounds_ref[4]) &
              (z >= bounds_ref[2]) & (z <= bounds_ref[5]))
    mask_ref[...] = (inside & (v != 0.0)).astype(jnp.int32)


def compute_valid_bounding_mask(flat_coord4, ref_coord3):
    """flat_coord4: (P, 4) f32; ref_coord3: (N3d, 3) f32 -> (P,) bool."""
    P = flat_coord4.shape[0]
    # TODO(synk): if the producer can emit coords channel-major (4, P), this
    # transpose (one full HBM pass) disappears.
    coord_t = jnp.transpose(flat_coord4)                 # (4, P), points on lanes
    rmin = jnp.min(ref_coord3, axis=0)
    rmax = jnp.max(ref_coord3, axis=0)
    bounds = jnp.concatenate([rmin, rmax]).astype(jnp.float32)   # (6,)

    # lane tile over points: multiple of 128, ~1 MiB of coords per step,
    # even step count for v7x megacore balance.
    tp = _even_tile(P, 128, 65536)
    grid = (pl.cdiv(P, tp),)

    mask = pl.pallas_call(
        _mask_kernel,
        out_shape=jax.ShapeDtypeStruct((1, P), jnp.int32),
        grid=grid,
        in_specs=[pl.BlockSpec(memory_space=pltpu.MemorySpace.SMEM),
                  pl.BlockSpec((4, tp), lambda i: (0, i))],
        out_specs=pl.BlockSpec((1, tp), lambda i: (0, i)),
        compiler_params=pltpu.CompilerParams(dimension_semantics=("parallel",)),
    )(bounds, coord_t)
    return mask[0] > 0


# --------------------------------------------------------------------------
# Pallas kernel 2: pointwise fusion MLP (stand-in for fusion_mlp; a SubMConv
# with kernel size 1 on sparse features is a per-point linear layer).
# Lane-packed: 4 rows per >=128-lane slab, block-diagonal bf16 weights,
# f32 accumulation / epilogue, row-valid masking fused into the epilogue,
# lane-dense f32 output stores.
# --------------------------------------------------------------------------
_PACK = 4


def _fusion_mlp_kernel(x_ref, rv_ref, w1_ref, b1_ref, w2_ref, b2_ref, o_ref):
    # x arrives bf16 from HBM (cast upstream of the gather/concat); the astype
    # is then a no-op. For plain f32 callers the cast happens in-VMEM here.
    x = x_ref[...].astype(jnp.bfloat16)                          # (tr, r*C)
    h = jnp.dot(x, w1_ref[...], preferred_element_type=jnp.float32)
    h = jnp.maximum(h + b1_ref[...], 0.0)                        # f32 epilogue
    o = jnp.dot(h.astype(jnp.bfloat16), w2_ref[...],
                preferred_element_type=jnp.float32) + b2_ref[...]
    # row-validity masking fused into the epilogue: expand the per-row flags
    # (tr, r) across the Cout lanes with VPU selects (no extra HBM pass).
    rv = rv_ref[...]                                             # (tr, r) f32 0/1
    r = rv.shape[1]
    cout = o.shape[1] // r
    slot = lax.broadcasted_iota(jnp.int32, o.shape, 1) // cout   # lane -> packed row
    m = jnp.zeros_like(o)
    for j in range(r):                                           # r<=4, unrolled
        m = jnp.where(slot == j, rv[:, j:j + 1], m)
    o_ref[...] = o * m                                           # (tr, r*Cout) f32


def _block_diag(w, r):
    return jnp.kron(jnp.eye(r, dtype=w.dtype), w)


def fusion_mlp_pallas(x, w1, b1, w2, b2, row_valid=None):
    """x:(M,C), w1:(C,Hd), b1:(1,Hd), w2:(Hd,Cout), b2:(1,Cout),
    row_valid:(M,) bool or None -> (M,Cout) f32 with invalid rows zeroed."""
    M, C = x.shape
    Hd = w1.shape[1]
    Cout = w2.shape[1]
    b1 = jnp.reshape(b1, (1, -1)).astype(jnp.float32)
    b2 = jnp.reshape(b2, (1, -1)).astype(jnp.float32)
    if row_valid is None:
        row_valid = jnp.ones((M,), bool)

    # Lane-packing only pays when channel dims are small; with >=128 channels
    # the block-diagonal trick would waste 75% of MXU FLOPs for no lane gain.
    r = 1 if (C >= 128 and Hd >= 128 and Cout >= 128) else _PACK

    # only a tiny (< r row) pad so M is a multiple of the packing factor;
    # ragged row tiles are handled by Pallas boundary blocks.
    Mp = _round_up(M, r)
    if Mp != M:
        x = jnp.pad(x, ((0, Mp - M), (0, 0)))
        row_valid = jnp.pad(row_valid, (0, Mp - M))
    M4 = Mp // r

    # lane-dense repacking: r consecutive rows share one >=128-lane slab.
    # NOTE: no dtype cast here (no extra HBM pass) — the kernel casts whatever
    # arrives; callers that can, pass bf16.
    xp = x.reshape(M4, r * C)
    rvp = row_valid.astype(jnp.float32).reshape(M4, r)
    w1b = _block_diag(w1, r).astype(jnp.bfloat16)                # (r*C,  r*Hd)
    w2b = _block_diag(w2, r).astype(jnp.bfloat16)                # (r*Hd, r*Cout)
    b1b = jnp.tile(b1, (1, r))                                   # (1, r*Hd)
    b2b = jnp.tile(b2, (1, r))                                   # (1, r*Cout)

    # packed-row tile: up to 2048 packed rows per step (~1 MiB output buffer),
    # multiple of 16 for bf16 sublane tiling, even grid step count for v7x.
    tr = _even_tile(M4, 16, 2048)
    grid = (pl.cdiv(M4, tr),)

    out = pl.pallas_call(
        _fusion_mlp_kernel,
        out_shape=jax.ShapeDtypeStruct((M4, r * Cout), jnp.float32),
        grid=grid,
        in_specs=[pl.BlockSpec((tr, r * C), lambda i: (i, 0)),
                  pl.BlockSpec((tr, r), lambda i: (i, 0)),
                  pl.BlockSpec((r * C, r * Hd), lambda i: (0, 0)),
                  pl.BlockSpec((1, r * Hd), lambda i: (0, 0)),
                  pl.BlockSpec((r * Hd, r * Cout), lambda i: (0, 0)),
                  pl.BlockSpec((1, r * Cout), lambda i: (0, 0))],
        out_specs=pl.BlockSpec((tr, r * Cout), lambda i: (i, 0)),
        compiler_params=pltpu.CompilerParams(
            dimension_semantics=("parallel",),
            # big tiles + the (tr, r*Hd) f32 hidden spill stay well under this;
            # explicit so v5e's 16 MiB default scoped VMEM never trips.
            vmem_limit_bytes=32 * 1024 * 1024),
    )(xp, rvp, w1b, b1b, w2b, b2b)
    # TODO(synk): emit bf16 here if downstream tolerates it (halves the dominant
    # HBM write stream); kept f32 to match the PyTorch reference dtype.
    return out.reshape(Mp, Cout)[:M]


# --------------------------------------------------------------------------
# PointFusion.forward equivalent (sparse tensors represented as dicts)
# --------------------------------------------------------------------------
def point_fusion_forward(feat_2d_all, feat_3d, unprojected_coord, init_3d_data,
                         mlp_params, grid_size=0.02):
    w1, b1, w2, b2 = mlp_params
    feat3d_feats = feat_3d["features"]                   # (N3d, C)
    feat3d_idx = feat_3d["indices"]                      # (N3d, 4) int32
    init_coord = init_3d_data["coord"]                   # (N3d, 3)
    spatial_shape = feat_3d["spatial_shape"]

    # flatten 2D features exactly like permute(0,2,3,1).view(-1, C); cast to
    # bf16 here so the downstream gather + concat + MLP read all move 2 B/elem
    # (the fusion MLP multiplies in bf16 regardless).
    V, C, H, W = feat_2d_all.shape
    feat_flat = jnp.transpose(feat_2d_all, (0, 2, 3, 1)).reshape(-1, C)
    feat_flat = feat_flat.astype(jnp.bfloat16)                            # (P, C)
    feat3d_feats_bf = feat3d_feats.astype(jnp.bfloat16)

    # flatten unprojected coordinates: batch 0, view(-1, 4)
    flat_coord = unprojected_coord[0].reshape(-1, 4)                      # (P, 4)
    P = flat_coord.shape[0]

    # ---- Pallas kernel 1: valid & bounding-box mask (fused, tiled) ----
    mask = compute_valid_bounding_mask(flat_coord, init_coord)            # (P,) bool

    # order-preserving compaction padded to P; only indices/coords are gathered
    # here — features are gathered ONCE below via the composed index.
    count = jnp.sum(mask.astype(jnp.int32))
    order = jnp.nonzero(mask, size=P, fill_value=0)[0]
    sel_valid = jnp.arange(P) < count
    sel_coords = flat_coord[order][:, :3]                                 # (P, 3)

    # ---- grid sampling (voxelization) ----
    # TODO(synk): GridSample uses an FNV hash with random per-voxel sampling in
    # 'train' mode; replaced by a deterministic first-occurrence dedup over an
    # integer voxel key, so per-voxel sample/order differ.
    min_coord = jnp.min(init_coord, axis=0)
    grid_coord = jnp.floor((sel_coords - min_coord[None, :]) / grid_size).astype(jnp.int32)
    sx, sy, sz = int(spatial_shape[0]), int(spatial_shape[1]), int(spatial_shape[2])
    # TODO(synk): assumes sx*sy*sz < 2**31; use wider keys for larger spatial shapes.
    smax = jnp.array([sx - 1, sy - 1, sz - 1], jnp.int32)
    grid_coord = jnp.clip(grid_coord, 0, smax[None, :])
    voxel_key = (grid_coord[:, 0] * sy + grid_coord[:, 1]) * sz + grid_coord[:, 2]
    sentinel = jnp.int32(sx * sy * sz)
    voxel_key = jnp.where(sel_valid, voxel_key, sentinel)      # fill rows -> sentinel
    uvals, uidx = jnp.unique(voxel_key, size=P, fill_value=sentinel, return_index=True)
    uidx = jnp.clip(uidx, 0, P - 1)
    samp_valid = uvals != sentinel                                        # (P,) bool
    g2d = order[uidx]                         # composed gather indices into feat_flat
    samp_feats = feat_flat[g2d]                          # (P, C) bf16, single gather
    samp_grid = jnp.where(samp_valid[:, None], grid_coord[uidx], 0)
    samp_coords = jnp.where(samp_valid[:, None], sel_coords[uidx], 0.0)

    # TODO(synk): the data-dependent "no valid coordinates -> early return" branch
    # cannot be expressed with static shapes; padded rows are masked via row_valid.

    # build combined sparse tensor (cat along rows, like _fuse_features)
    indices_2d = jnp.concatenate(
        [jnp.zeros((P, 1), jnp.int32), samp_grid.astype(jnp.int32)], axis=1)
    all_features = jnp.concatenate([feat3d_feats_bf, samp_feats], axis=0)  # (M, C) bf16
    all_indices = jnp.concatenate([feat3d_idx, indices_2d], axis=0)        # (M, 4)
    row_valid = jnp.concatenate(
        [jnp.ones((feat3d_feats.shape[0],), bool), samp_valid], axis=0)

    # ---- Pallas kernel 2: pointwise fusion MLP over combined features ----
    # (row_valid masking is applied inside the kernel epilogue — no extra pass)
    fused = fusion_mlp_pallas(all_features, w1, b1, w2, b2, row_valid=row_valid)

    # _update_init_3d_data
    new_init_3d = dict(init_3d_data)
    new_init_3d["coord"] = jnp.concatenate([init_coord, samp_coords], axis=0)
    new_init_3d["batch"] = all_indices[:, 0]
    new_init_3d["grid_coord"] = all_indices[:, 1:]

    fused_sparse = {
        "features": fused,
        "indices": all_indices,
        "spatial_shape": feat_3d["spatial_shape"],
        "batch_size": feat_3d["batch_size"],
        "row_valid": row_valid,   # marks padding rows (dynamic point count)
    }
    return fused_sparse, new_init_3d


# --------------------------------------------------------------------------
if __name__ == "__main__":
    key = jax.random.PRNGKey(0)
    V, C, H, W = 2, 32, 8, 8          # viewNum=2, fea2d_dim=32
    N3d = 64
    Hd, Cout = 64, 32
    k = jax.random.split(key, 10)

    feat_2d_all = jax.random.normal(k[0], (V, C, H, W), jnp.float32)
    coords3 = jax.random.uniform(k[1], (1, V, H, W, 3), jnp.float32, -0.6, 0.6)
    valid_flag = (jax.random.uniform(k[2], (1, V, H, W, 1)) > 0.3).astype(jnp.float32)
    unprojected_coord = jnp.concatenate([coords3, valid_flag], axis=-1)   # (1,V,H,W,4)

    init_coord = jax.random.uniform(k[3], (N3d, 3), jnp.float32, -0.5, 0.5)
    feat3d_features = jax.random.normal(k[4], (N3d, C), jnp.float32)
    grid_idx = jnp.floor((init_coord - init_coord.min(0)) / 0.02).astype(jnp.int32)
    feat3d_indices = jnp.concatenate(
        [jnp.zeros((N3d, 1), jnp.int32), grid_idx], axis=1)
    feat_3d = {"features": feat3d_features, "indices": feat3d_indices,
               "spatial_shape": (64, 64, 64), "batch_size": 1}
    init_3d_data = {"coord": init_coord}

    # deterministic fusion-MLP parameters
    w1 = jax.random.normal(k[5], (C, Hd), jnp.float32) / jnp.sqrt(C)
    b1 = jax.random.normal(k[6], (1, Hd), jnp.float32) * 0.01
    w2 = jax.random.normal(k[7], (Hd, Cout), jnp.float32) / jnp.sqrt(Hd)
    b2 = jax.random.normal(k[8], (1, Cout), jnp.float32) * 0.01

    fused_sparse, new_init = point_fusion_forward(
        feat_2d_all, feat_3d, unprojected_coord, init_3d_data,
        (w1, b1, w2, b2), grid_size=0.02)
    jax.block_until_ready(fused_sparse["features"])

    # --- kernel 1 check against plain-JAX reference ---
    flat_coord = unprojected_coord[0].reshape(-1, 4)
    mask_kernel_out = compute_valid_bounding_mask(flat_coord, init_coord)
    mins, maxs = init_coord.min(0), init_coord.max(0)
    ref_mask = (flat_coord[:, 3] != 0) & jnp.all(
        (flat_coord[:, :3] >= mins) & (flat_coord[:, :3] <= maxs), axis=1)
    assert bool(jnp.array_equal(mask_kernel_out, ref_mask))

    # --- kernel 2 check against bf16-operand / f32-accumulate reference ---
    x_test = jax.random.normal(k[9], (192, C), jnp.float32)
    rv_test = jnp.arange(192) % 7 != 0                     # exercise row masking
    mlp_out = fusion_mlp_pallas(x_test, w1, b1, w2, b2, row_valid=rv_test)
    bf = lambda a: a.astype(jnp.bfloat16).astype(jnp.float32)
    h_ref = jnp.maximum(bf(x_test) @ bf(w1) + b1, 0.0)
    mlp_ref = (bf(h_ref) @ bf(w2) + b2) * rv_test[:, None]
    assert bool(jnp.allclose(mlp_out, mlp_ref, atol=2e-2, rtol=2e-2))

    print("KERNEL_OK")
</pallas_src>

<mosaic_0001>
module attributes {stable_mosaic.version = 11 : i64} {
  func.func @_mask_kernel(%arg0: i32, %arg1: memref<6xf32, #tpu.memory_space<smem>>, %arg2: memref<4x128xf32, #tpu.memory_space<vmem>>, %arg3: memref<1x128xi32, #tpu.memory_space<vmem>>) attributes {dimension_semantics = [#tpu.dimension_semantics<parallel>], iteration_bounds = array<i64: 1>, scalar_prefetch = 0 : i64, scratch_operands = 0 : i64, tpu.core_type = #tpu.core_type<tc>, window_params = [{transform_indices = @transform_0, window_bounds = array<i64: 6>}, {transform_indices = @transform_1, window_bounds = array<i64: 4, 128>}, {transform_indices = @transform_2, window_bounds = array<i64: 1, 128>}]} {
    %c0 = arith.constant 0 : index
    %c0_0 = arith.constant 0 : index
    %0 = vector.load %arg2[%c0, %c0_0] : memref<4x128xf32, #tpu.memory_space<vmem>>, vector<4x128xf32>
    %1 = vector.extract_strided_slice %0 {offsets = [0, 0], sizes = [1, 128], strides = [1, 1]} : vector<4x128xf32> to vector<1x128xf32>
    %2 = vector.extract_strided_slice %0 {offsets = [1, 0], sizes = [1, 128], strides = [1, 1]} : vector<4x128xf32> to vector<1x128xf32>
    %3 = vector.extract_strided_slice %0 {offsets = [2, 0], sizes = [1, 128], strides = [1, 1]} : vector<4x128xf32> to vector<1x128xf32>
    %4 = vector.extract_strided_slice %0 {offsets = [3, 0], sizes = [1, 128], strides = [1, 1]} : vector<4x128xf32> to vector<1x128xf32>
    %c0_1 = arith.constant 0 : index
    %5 = memref.load %arg1[%c0_1] : memref<6xf32, #tpu.memory_space<smem>>
    %6 = vector.broadcast %5 : f32 to vector<1x128xf32>
    %7 = arith.cmpf oge, %1, %6 : vector<1x128xf32>
    %c3 = arith.constant 3 : index
    %8 = memref.load %arg1[%c3] : memref<6xf32, #tpu.memory_space<smem>>
    %9 = vector.broadcast %8 : f32 to vector<1x128xf32>
    %10 = arith.cmpf ole, %1, %9 : vector<1x128xf32>
    %11 = arith.andi %7, %10 : vector<1x128xi1>
    %c1 = arith.constant 1 : index
    %12 = memref.load %arg1[%c1] : memref<6xf32, #tpu.memory_space<smem>>
    %13 = vector.broadcast %12 : f32 to vector<1x128xf32>
    %14 = arith.cmpf oge, %2, %13 : vector<1x128xf32>
    %15 = arith.andi %11, %14 : vector<1x128xi1>
    %c4 = arith.constant 4 : index
    %16 = memref.load %arg1[%c4] : memref<6xf32, #tpu.memory_space<smem>>
    %17 = vector.broadcast %16 : f32 to vector<1x128xf32>
    %18 = arith.cmpf ole, %2, %17 : vector<1x128xf32>
    %19 = arith.andi %15, %18 : vector<1x128xi1>
    %c2 = arith.constant 2 : index
    %20 = memref.load %arg1[%c2] : memref<6xf32, #tpu.memory_space<smem>>
    %21 = vector.broadcast %20 : f32 to vector<1x128xf32>
    %22 = arith.cmpf oge, %3, %21 : vector<1x128xf32>
    %23 = arith.andi %19, %22 : vector<1x128xi1>
    %c5 = arith.constant 5 : index
    %24 = memref.load %arg1[%c5] : memref<6xf32, #tpu.memory_space<smem>>
    %25 = vector.broadcast %24 : f32 to vector<1x128xf32>
    %26 = arith.cmpf ole, %3, %25 : vector<1x128xf32>
    %27 = arith.andi %23, %26 : vector<1x128xi1>
    %cst = arith.constant 0.000000e+00 : f32
    %28 = vector.broadcast %cst : f32 to vector<1x128xf32>
    %29 = arith.cmpf one, %4, %28 : vector<1x128xf32>
    %30 = arith.andi %27, %29 : vector<1x128xi1>
    %31 = arith.extui %30 : vector<1x128xi1> to vector<1x128xi32>
    %c0_2 = arith.constant 0 : index
    %c0_3 = arith.constant 0 : index
    %32 = vector.load %arg3[%c0_2, %c0_3] : memref<1x128xi32, #tpu.memory_space<vmem>>, vector<1x128xi32>
    tpu.vector_store %arg3[%c0_2, %c0_3], %31 {strides = array<i32>} : memref<1x128xi32, #tpu.memory_space<vmem>>, vector<1x128xi32>,
    return
  }
  func.func @transform_0(%arg0: i32) -> i32 {
    %c0_i32 = arith.constant 0 : i32
    %c0_i32_0 = arith.constant 0 : i32
    return %c0_i32 : i32
  }
  func.func @transform_1(%arg0: i32) -> (i32, i32) {
    %c0_i32 = arith.constant 0 : i32
    %c0_i32_0 = arith.constant 0 : i32
    return %c0_i32, %arg0 : i32, i32
  }
  func.func @transform_2(%arg0: i32) -> (i32, i32) {
    %c0_i32 = arith.constant 0 : i32
    %c0_i32_0 = arith.constant 0 : i32
    return %c0_i32, %arg0 : i32, i32
  }
}

</mosaic_0001>

<bundles_post_ra>
// kernel: tpu_custom_call.1
= control target key start
LH: loop header
LB: loop body
LE: loop exit
PB: predicated region body
PF: predicated region fallthrough
CT: control target
= control target key end

     0   :  { %7 = vsyncpa [#allocation5], 0  ;;  %s197_s0 = inlined_call_operand.hbm [shape: f32[6], index: 0, kind: input, shape index: {}]   ;;  %s198_s1 = inlined_call_operand.hbm [shape: f32[4,128], index: 1, kind: input, shape index: {}]   ;;  %s199_s2 = inlined_call_operand.hbm [shape: s32[1,128], index: 2, kind: output, shape index: {}]  }
   0x1   :  { %8 = vsyncpa [#allocation3], 0 }
   0x2   :  { %9 = vsyncpa [#allocation4], 0  ;;  %s157_s9 = smov [#allocation2]   ;;  %s158_s12 = smov [#allocation6]  }
   0x3   :  { %17 = dma.hbm_to_smem %s197_s0, 16, %s157_s9, [#allocation5]  }
   0x4   :  { %s24_s13 = sshll.u32 %s158_s12, 4  ;;  %s25_s13 = int_to_ptr.vmem [resolvable:$true] %s24_s13 }
   0x5   :  { %s119_s14 = scalar_lea.vmem %s25_s13, 64  ;;  %p124_p1 = scmp.lt.s32.totalorder %s25_s13, %s25_s13 }
   0x6   :  { %p120_p0 = scmp.ne.s32.totalorder %s25_s13, %s119_s14  ;;  %p125_p2 = scmp.lt.s32.totalorder %s119_s14, %s119_s14 }
   0x8   :  { %p126_p3 = por %p125_p2, %p124_p1 }
   0xa   :  { %p127_p4 = pnand %p126_p3, %p120_p0 }
   0xc   :  { %130 = shalt.err (!%p127_p4)
}
   0xd   :  { %27 = dma.hbm_to_vmem [thread:$0]  %s198_s1, 64, %s25_s13, [#allocation3]  }
   0xe   :  { %151 = dma.done.wait [#allocation5], 16  }
   0xf   :  { %152 = vsyncadd [#allocation5], 4294967280 }
  0x10   :  { %153 = dma.done.wait [#allocation3], 64  }
  0x11   :  { %154 = vsyncadd [#allocation3], 4294967232 }
  0x12   :  { %34 = sfence }
  0x13   :  { %s36_s0 = sld [smem:[#allocation2]]  ;;  %v35_v0 = vld [vmem:[#allocation6] sm:$0xf]  ;;  %v159_v3 = vmov 0   ;;  %s160_s1 = smov [#allocation7]  }
  0x14   :  { %s94_s17 = sld [smem:[#allocation2 + $0x3]]  ;;  %vm71_vm0 = vcmp.ne.f32.partialorder %v35_v0, 0.0  ;;  %s84_s22 = sshll.u32 %s160_s1, 4  ;;  %s85_s22 = int_to_ptr.vmem [resolvable:$true] %s84_s22 }
  0x15   :  { %s95_s18 = sld [smem:[#allocation2 + $0x1]]  ;;  %v72_v4 = vsel %vm71_vm0, 1, %v159_v3  ;;  %s131_s23 = scalar_lea.vmem %s85_s22, 16 }
  0x16   :  { %s96_s19 = sld [smem:[#allocation2 + $0x4]]  ;;  %v73_v11 = vrot.slane %v72_v4, 3  ;;  %p132_p5 = scmp.ne.s32.totalorder %s85_s22, %s131_s23 }
  0x17   :  { %s97_s20 = sld [smem:[#allocation2 + $0x2]]  ;;  %s135_s24 = scalar_lea.vmem %s85_s22, 32 }
  0x18   :  { %s98_s21 = sld [smem:[#allocation2 + $0x5]]  ;;  %vm74_vm13 = vcmp.ne.s32.totalorder %v73_v11, 0  ;;  %p136_p6 = scmp.lt.s32.totalorder %s85_s22, %s85_s22 }
  0x19   :  { %v37_v1 = vstv %s36_s0  ;;  %p137_p7 = scmp.lt.s32.totalorder %s135_s24, %s131_s23 }
  0x1a   :  { %v40_v2 = vstv %s94_s17  ;;  %vm182_vm1 = vcmp.ge.f32.partialorder %v35_v0, %v37_v1 }
  0x1b   :  { %vm186_vm2 = vcmp.le.f32.partialorder %v35_v0, %v40_v2  ;;  %v44_v7 = vstv %s95_s18  ;;  %p138_p8 = por %p137_p7, %p136_p6 }
  0x1c   :  { %vm45_vm3 = vcmp.ge.f32.partialorder %v35_v0, %v44_v7  ;;  %v51_v8 = vstv %s96_s19  ;;  %vm42_vm5 = vmand %vm182_vm1, %vm186_vm2 }
  0x1d   :  { %v46_v9 = vsel %vm45_vm3, 1, %v159_v3  ;;  %vm52_vm4 = vcmp.le.f32.partialorder %v35_v0, %v51_v8  ;;  %v58_v10 = vstv %s97_s20  ;;  %p139_p9 = pnand %p138_p8, %p132_p5 }
  0x1e   :  { %v47_v12 = vrot.slane %v46_v9, 1  ;;  %v53_v13 = vsel %vm52_vm4, 1, %v159_v3  ;;  %vm59_vm6 = vcmp.ge.f32.partialorder %v35_v0, %v58_v10  ;;  %v65_v14 = vstv %s98_s21 }
  0x1f   :  { %v54_v15 = vrot.slane %v53_v13, 1  ;;  %v60_v16 = vsel %vm59_vm6, 1, %v159_v3  ;;  %vm66_vm7 = vcmp.le.f32.partialorder %v35_v0, %v65_v14 }
  0x20   :  { %vm48_vm8 = vcmp.ne.s32.totalorder %v47_v12, 0  ;;  %v61_v17 = vrot.slane %v60_v16, 2  ;;  %v67_v18 = vsel %vm66_vm7, 1, %v159_v3 }
  0x21   :  { %vm49_vm9 = vmand %vm42_vm5, %vm48_vm8  ;;  %vm55_vm10 = vcmp.ne.s32.totalorder %v54_v15, 0  ;;  %v68_v19 = vrot.slane %v67_v18, 2 }
  0x22   :  { %vm56_vm11 = vmand %vm49_vm9, %vm55_vm10  ;;  %vm62_vm12 = vcmp.ne.s32.totalorder %v61_v17, 0 }
  0x23   :  { %vm63_vm14 = vmand %vm56_vm11, %vm62_vm12  ;;  %vm69_vm15 = vcmp.ne.s32.totalorder %v68_v19, 0 }
  0x24   :  { %vm70_vm0 = vmand %vm63_vm14, %vm69_vm15 }
  0x25   :  { %vm75_vm1 = vmand %vm70_vm0, %vm74_vm13 }
  0x26   :  { %v76_v20 = vsel %vm75_vm1, 1, %v159_v3 }
  0x27   :  { %77 = vst [vmem:[#allocation7] sm:$0x1] %v76_v20 }
  0x28   :  { %142 = shalt.err (!%p139_p9)
}
  0x29   :  { %87 = dma.vmem_to_hbm [thread:$0]  %s85_s22, 16, %s199_s2, [#allocation4]  }
  0x2a   :  { %155 = dma.done.wait [#allocation4], 16  }
  0x2b   :  { %156 = vsyncadd [#allocation4], 4294967280 }
  0x2c   :  { %91 = vsyncpa [#allocation3], 1 }
  0x2d   :  { %92 = vsyncpa [#allocation4], 1 }
  0x2e   :  { %93 = vsyncpa [#allocation5], 1 }

</bundles_post_ra>
